<compile_context>
chip_gen: v7x
topology: tpu7x:2x2x1
jax: 0.10.0
libtpu: 0.0.40
codegen_flags: <defaults>
</compile_context>

<pallas_src>
import functools

import jax
import jax.numpy as jnp
from jax import lax
from jax.experimental import pallas as pl
from jax.experimental.pallas import tpu as pltpu


def ff_biconv3_kernel(x_ref, w_ref, p_ref, cm_ref, o_ref, *, W):
    Bb, C, PIX = x_ref.shape
    PAD = W + 1   # flat-index halo: every 3x3 tap offset fits inside +/-PAD lanes

    w = w_ref[...]            # (C, 9*C) bf16: sign(w_std), tap-major
    b11 = p_ref[0]            # (C, 1) move11 bias
    b12 = p_ref[1]            # (C, 1) move12 bias
    b13 = p_ref[2]            # (C, 1) move13 bias
    pw = p_ref[3]             # (C, 1) PReLU slope
    cscale = p_ref[4]         # (C, 1) alpha * gain * mean|w_std|  (per out channel)
    beta1 = p_ref[5]          # (C, 1) beta1 (same value in every row)

    cm = cm_ref[...]          # (2, PIX) 0/1 f32, precomputed once in the wrapper
    not_last = cm[0:1, :]     # 0 at column W-1
    not_first = cm[1:2, :]    # 0 at column 0

    x = x_ref[...]            # (Bb, C, PIX) f32 -- Bb fused images, NCHW flattened
    xb = x * beta1
    a = xb + b11
    # Binary activation: forward value == sign (sign(0) == 0), in f32.
    act = jnp.where(a > 0, 1.0, jnp.where(a < 0, -1.0, 0.0))

    # F.conv2d zero-pads the *binarized* activation.  In flat row-major coords a
    # tap (dh, dw) is a constant lane shift of dh*W + dw.  Pre-zeroing the input
    # column that a dw=-1 / dw=+1 tap would wrongly read across a row boundary
    # (col W-1 / col 0 respectively) reproduces the horizontal padding; the
    # (C, PAD) zero lane extension below reproduces the top/bottom padding.
    # +-1/0 values are exact in bf16, so everything after the f32 mask multiply
    # is narrowed immediately (feedback item 2: no f32 (9C, N) intermediate).
    act_kw = ((act * not_last).astype(jnp.bfloat16),    # source for kw=0 (dw=-1)
              act.astype(jnp.bfloat16),                 # kw=1
              (act * not_first).astype(jnp.bfloat16))   # kw=2 (dw=+1)

    zpad = jnp.zeros((C, PAD), jnp.bfloat16)
    slabs = [[jnp.concatenate([zpad, act_kw[kw][b], zpad], axis=1)   # (C, PIX+2*PAD)
              for kw in range(3)] for b in range(Bb)]

    # im2col patch (9C, Bb*PIX), built one bf16 tap-row at a time.
    tap_rows = []
    for kh in range(3):
        for kw in range(3):
            off = (kh - 1) * W + (kw - 1)
            pieces = [lax.slice(slabs[b][kw], (0, PAD + off),
                                (C, PAD + off + PIX)) for b in range(Bb)]
            tap_rows.append(pieces[0] if Bb == 1
                            else jnp.concatenate(pieces, axis=1))
    patch = jnp.concatenate(tap_rows, axis=0)           # (9C, Bb*PIX) bf16

    # ONE MXU matmul for all fused images; +/-1 bf16 operands exact, f32 accum.
    conv = jnp.dot(w, patch, preferred_element_type=jnp.float32)   # (C, Bb*PIX)

    # Fused epilogue on (C, Bb*PIX): residual + alpha*conv, move12, PReLU, move13.
    xb2 = xb[0] if Bb == 1 else jnp.concatenate([xb[b] for b in range(Bb)], axis=1)
    out = xb2 + conv * cscale + b12
    out = jnp.where(out > 0, out, out * pw)
    out = out + b13

    for b in range(Bb):
        o_ref[b] = lax.slice(out, (0, b * PIX),
                             (C, (b + 1) * PIX)).astype(o_ref.dtype)


def _standardize_weight(weight_oihw, gamma=1.0, eps=1e-5):
    """Weight standardization of HardBinaryScaledStdConv2d.get_weight().

    torch.std_mean(..., unbiased=False) == jnp.std (population std).
    """
    cout, cin, kh, kw = weight_oihw.shape
    scale = gamma * float(cin * kh * kw) ** -0.5
    mean = jnp.mean(weight_oihw, axis=(1, 2, 3), keepdims=True)
    std = jnp.std(weight_oihw, axis=(1, 2, 3), keepdims=True)
    w_std = scale * (weight_oihw - mean) / (std + eps)
    scaling = jnp.mean(jnp.abs(w_std), axis=(1, 2, 3), keepdims=True)
    return w_std, scaling


def scaled_std_binary_weight(weight_oihw, gain, gamma=1.0, eps=1e-5):
    """get_weight() forward value: gain * scaling * sign(w_std)."""
    w_std, scaling = _standardize_weight(weight_oihw, gamma, eps)
    return gain * scaling * jnp.sign(w_std)


def _prepare_kernel_operands(weight, gain, b11, b12, b13, prelu_w, alpha, beta1):
    """Tiny parameter prep done in plain JAX (O(C^2) work, traced — no recompiles)."""
    cout, cin, kh, kw = weight.shape
    w_std, scaling = _standardize_weight(weight)
    # Tap-major sign matrix: w_flat[co, (kh*3+kw)*cin + ci] = sign(w_std)[co, ci, kh, kw]
    w_flat = jnp.transpose(jnp.sign(w_std), (0, 2, 3, 1)).reshape(cout, kh * kw * cin)
    w_flat = w_flat.astype(jnp.bfloat16)          # values in {-1, 0, +1}: exact
    conv_scale = alpha * gain.reshape(cout) * scaling.reshape(cout)
    beta1_row = jnp.ones((cout,), jnp.float32) * beta1
    packed = jnp.stack([b11, b12, b13, prelu_w, conv_scale, beta1_row],
                       axis=0).astype(jnp.float32).reshape(6, cout, 1)
    return w_flat, packed


def _column_masks(H, W):
    """0/1 column masks, computed once in the wrapper (hoisted out of the kernel)."""
    col = jnp.arange(H * W, dtype=jnp.int32) % W
    not_last = (col != (W - 1)).astype(jnp.float32)   # zeroes col W-1 (kw=0 taps)
    not_first = (col != 0).astype(jnp.float32)        # zeroes col 0   (kw=2 taps)
    return jnp.stack([not_last, not_first], axis=0)   # (2, H*W)


def _pick_batch_fusion(B):
    """Largest fusion factor that keeps >= 4 grid steps (>=2 per TC on v7x),
    falling back to >= 2 steps, then 1."""
    for min_steps in (4, 2, 1):
        for bb in (8, 4, 2, 1):
            if B % bb == 0 and B // bb >= min_steps:
                return bb
    return 1


@jax.jit
def ff_biconv3_forward(x_nchw, params, alpha, beta1):
    weight, gain, b11, b12, b13, prelu_w = params
    B, C, H, W = x_nchw.shape
    PIX = H * W
    Bb = _pick_batch_fusion(B)

    w_flat, packed = _prepare_kernel_operands(weight, gain, b11, b12, b13,
                                              prelu_w, alpha, beta1)
    cmask = _column_masks(H, W)
    x_flat = x_nchw.reshape(B, C, PIX)    # contiguous reshape (free), NCHW kept

    kern = functools.partial(ff_biconv3_kernel, W=W)
    out = pl.pallas_call(
        kern,
        out_shape=jax.ShapeDtypeStruct((B, C, PIX), x_nchw.dtype),
        grid_spec=pltpu.PrefetchScalarGridSpec(
            num_scalar_prefetch=0,
            grid=(B // Bb,),
            in_specs=[
                pl.BlockSpec((Bb, C, PIX), lambda g: (g, 0, 0)),
                pl.BlockSpec((C, 9 * C), lambda g: (0, 0)),     # invariant: DMA'd once
                pl.BlockSpec((6, C, 1), lambda g: (0, 0, 0)),   # invariant: DMA'd once
                pl.BlockSpec((2, PIX), lambda g: (0, 0)),       # invariant: DMA'd once
            ],
            out_specs=pl.BlockSpec((Bb, C, PIX), lambda g: (g, 0, 0)),
        ),
        compiler_params=pltpu.CompilerParams(
            dimension_semantics=("parallel",),   # independent blocks -> v7x megacore
            vmem_limit_bytes=32 * 1024 * 1024,
        ),
    )(x_flat, w_flat, packed, cmask)

    return out.reshape(B, C, H, W)


def ff_biconv3_reference(x_nchw, params, alpha, beta1):
    """Pure-JAX reference mirroring the PyTorch forward (NCHW)."""
    weight, gain, b11, b12, b13, prelu_w = params
    C = x_nchw.shape[1]
    xb = x_nchw * beta1
    act = jnp.sign(xb + b11.reshape(1, C, 1, 1))
    wq = scaled_std_binary_weight(weight, gain)
    conv = lax.conv_general_dilated(
        act, wq, window_strides=(1, 1), padding=((1, 1), (1, 1)),
        dimension_numbers=('NCHW', 'OIHW', 'NCHW'))
    out = xb + conv * alpha
    out = out + b12.reshape(1, C, 1, 1)
    pw = prelu_w.reshape(1, C, 1, 1)
    out = jnp.where(out > 0, out, out * pw)
    out = out + b13.reshape(1, C, 1, 1)
    return out


if __name__ == "__main__":
    B, C, H, W = 8, 8, 16, 16          # inplanes == planes == C
    alpha, beta1 = 0.25, 0.8

    key = jax.random.PRNGKey(0)
    k = jax.random.split(key, 7)
    x = jax.random.normal(k[0], (B, C, H, W), jnp.float32)

    # Deterministic parameter init (shapes from module __init__).
    weight = jax.random.uniform(k[1], (C, C, 3, 3), jnp.float32) * 0.001
    gain = jnp.ones((C, 1, 1, 1), jnp.float32) \
        + 0.1 * jax.random.normal(k[2], (C, 1, 1, 1), jnp.float32)
    b11 = 0.05 * jax.random.normal(k[3], (C,), jnp.float32)   # move11 bias
    b12 = 0.05 * jax.random.normal(k[4], (C,), jnp.float32)   # move12 bias
    b13 = 0.05 * jax.random.normal(k[5], (C,), jnp.float32)   # move13 bias
    prelu_w = jnp.full((C,), 0.25, jnp.float32) \
        + 0.01 * jax.random.normal(k[6], (C,), jnp.float32)   # PReLU slope

    params = (weight, gain, b11, b12, b13, prelu_w)

    out = ff_biconv3_forward(x, params, alpha, beta1)
    out = jax.block_until_ready(out)

    ref = ff_biconv3_reference(x, params, alpha, beta1)
    assert out.shape == (B, C, H, W)
    max_err = float(jnp.max(jnp.abs(out - ref)))
    assert jnp.allclose(out, ref, atol=1e-4, rtol=1e-4), f"max_err={max_err}"

    print("KERNEL_OK")
</pallas_src>

<mosaic_0001>
module attributes {stable_mosaic.version = 11 : i64} {
  func.func @ff_biconv3_kernel(%arg0: i32, %arg1: memref<2x8x256xf32, #tpu.memory_space<vmem>>, %arg2: memref<8x72xbf16, #tpu.memory_space<vmem>>, %arg3: memref<6x8x1xf32, #tpu.memory_space<vmem>>, %arg4: memref<2x256xf32, #tpu.memory_space<vmem>>, %arg5: memref<2x8x256xf32, #tpu.memory_space<vmem>>) attributes {dimension_semantics = [#tpu.dimension_semantics<parallel>], iteration_bounds = array<i64: 4>, scalar_prefetch = 0 : i64, scratch_operands = 0 : i64, tpu.core_type = #tpu.core_type<tc>, window_params = [{transform_indices = @transform_0, window_bounds = array<i64: 2, 8, 256>}, {pipeline_mode = #tpu.pipeline_mode<synchronous>, transform_indices = @transform_1, window_bounds = array<i64: 8, 72>}, {pipeline_mode = #tpu.pipeline_mode<synchronous>, transform_indices = @transform_2, window_bounds = array<i64: 6, 8, 1>}, {pipeline_mode = #tpu.pipeline_mode<synchronous>, transform_indices = @transform_3, window_bounds = array<i64: 2, 256>}, {transform_indices = @transform_4, window_bounds = array<i64: 2, 8, 256>}]} {
    %c0 = arith.constant 0 : index
    %c0_0 = arith.constant 0 : index
    %0 = vector.load %arg2[%c0, %c0_0] : memref<8x72xbf16, #tpu.memory_space<vmem>>, vector<8x72xbf16>
    %c0_1 = arith.constant 0 : index
    %c0_2 = arith.constant 0 : index
    %c0_3 = arith.constant 0 : index
    %1 = vector.load %arg3[%c0_1, %c0_2, %c0_3] : memref<6x8x1xf32, #tpu.memory_space<vmem>>, vector<1x8x1xf32>
    %2 = vector.shape_cast %1 : vector<1x8x1xf32> to vector<8x1xf32>
    %c1 = arith.constant 1 : index
    %c0_4 = arith.constant 0 : index
    %c0_5 = arith.constant 0 : index
    %3 = vector.load %arg3[%c1, %c0_4, %c0_5] : memref<6x8x1xf32, #tpu.memory_space<vmem>>, vector<1x8x1xf32>
    %4 = vector.shape_cast %3 : vector<1x8x1xf32> to vector<8x1xf32>
    %c2 = arith.constant 2 : index
    %c0_6 = arith.constant 0 : index
    %c0_7 = arith.constant 0 : index
    %5 = vector.load %arg3[%c2, %c0_6, %c0_7] : memref<6x8x1xf32, #tpu.memory_space<vmem>>, vector<1x8x1xf32>
    %6 = vector.shape_cast %5 : vector<1x8x1xf32> to vector<8x1xf32>
    %c3 = arith.constant 3 : index
    %c0_8 = arith.constant 0 : index
    %c0_9 = arith.constant 0 : index
    %7 = vector.load %arg3[%c3, %c0_8, %c0_9] : memref<6x8x1xf32, #tpu.memory_space<vmem>>, vector<1x8x1xf32>
    %8 = vector.shape_cast %7 : vector<1x8x1xf32> to vector<8x1xf32>
    %c4 = arith.constant 4 : index
    %c0_10 = arith.constant 0 : index
    %c0_11 = arith.constant 0 : index
    %9 = vector.load %arg3[%c4, %c0_10, %c0_11] : memref<6x8x1xf32, #tpu.memory_space<vmem>>, vector<1x8x1xf32>
    %10 = vector.shape_cast %9 : vector<1x8x1xf32> to vector<8x1xf32>
    %c5 = arith.constant 5 : index
    %c0_12 = arith.constant 0 : index
    %c0_13 = arith.constant 0 : index
    %11 = vector.load %arg3[%c5, %c0_12, %c0_13] : memref<6x8x1xf32, #tpu.memory_space<vmem>>, vector<1x8x1xf32>
    %12 = vector.shape_cast %11 : vector<1x8x1xf32> to vector<8x1xf32>
    %c0_14 = arith.constant 0 : index
    %c0_15 = arith.constant 0 : index
    %13 = vector.load %arg4[%c0_14, %c0_15] : memref<2x256xf32, #tpu.memory_space<vmem>>, vector<2x256xf32>
    %14 = vector.extract_strided_slice %13 {offsets = [0, 0], sizes = [1, 256], strides = [1, 1]} : vector<2x256xf32> to vector<1x256xf32>
    %15 = vector.extract_strided_slice %13 {offsets = [1, 0], sizes = [1, 256], strides = [1, 1]} : vector<2x256xf32> to vector<1x256xf32>
    %c0_16 = arith.constant 0 : index
    %c0_17 = arith.constant 0 : index
    %c0_18 = arith.constant 0 : index
    %16 = vector.load %arg1[%c0_16, %c0_17, %c0_18] : memref<2x8x256xf32, #tpu.memory_space<vmem>>, vector<2x8x256xf32>
    %17 = vector.shape_cast %12 : vector<8x1xf32> to vector<1x8x1xf32>
    %18 = vector.broadcast %17 : vector<1x8x1xf32> to vector<2x8x256xf32>
    %19 = arith.mulf %16, %18 : vector<2x8x256xf32>
    %20 = vector.shape_cast %2 : vector<8x1xf32> to vector<1x8x1xf32>
    %21 = vector.broadcast %20 : vector<1x8x1xf32> to vector<2x8x256xf32>
    %22 = arith.addf %19, %21 : vector<2x8x256xf32>
    %cst = arith.constant 0.000000e+00 : f32
    %23 = vector.broadcast %cst : f32 to vector<2x8x256xf32>
    %24 = arith.cmpf ogt, %22, %23 : vector<2x8x256xf32>
    %cst_19 = arith.constant 0.000000e+00 : f32
    %25 = vector.broadcast %cst_19 : f32 to vector<2x8x256xf32>
    %26 = arith.cmpf olt, %22, %25 : vector<2x8x256xf32>
    %cst_20 = arith.constant -1.000000e+00 : f32
    %cst_21 = arith.constant 0.000000e+00 : f32
    %27 = vector.broadcast %cst_20 : f32 to vector<2x8x256xf32>
    %28 = vector.broadcast %cst_21 : f32 to vector<2x8x256xf32>
    %29 = arith.select %26, %27, %28 : vector<2x8x256xi1>, vector<2x8x256xf32>
    %cst_22 = arith.constant 1.000000e+00 : f32
    %30 = vector.broadcast %cst_22 : f32 to vector<2x8x256xf32>
    %31 = arith.select %24, %30, %29 : vector<2x8x256xi1>, vector<2x8x256xf32>
    %32 = vector.shape_cast %14 : vector<1x256xf32> to vector<1x1x256xf32>
    %33 = vector.broadcast %32 : vector<1x1x256xf32> to vector<2x8x256xf32>
    %34 = arith.mulf %31, %33 : vector<2x8x256xf32>
    %35 = arith.truncf %34 : vector<2x8x256xf32> to vector<2x8x256xbf16>
    %36 = arith.truncf %31 : vector<2x8x256xf32> to vector<2x8x256xbf16>
    %37 = vector.shape_cast %15 : vector<1x256xf32> to vector<1x1x256xf32>
    %38 = vector.broadcast %37 : vector<1x1x256xf32> to vector<2x8x256xf32>
    %39 = arith.mulf %31, %38 : vector<2x8x256xf32>
    %40 = arith.truncf %39 : vector<2x8x256xf32> to vector<2x8x256xbf16>
    %cst_23 = arith.constant 0.000000e+00 : bf16
    %41 = vector.broadcast %cst_23 : bf16 to vector<8x17xbf16>
    %42 = vector.extract_strided_slice %35 {offsets = [0, 0, 0], sizes = [1, 8, 256], strides = [1, 1, 1]} : vector<2x8x256xbf16> to vector<1x8x256xbf16>
    %43 = vector.shape_cast %42 : vector<1x8x256xbf16> to vector<8x256xbf16>
    %44 = tpu.concatenate %41, %43, %41 in 1 : vector<8x17xbf16>, vector<8x256xbf16>, vector<8x17xbf16> -> vector<8x290xbf16>
    %45 = vector.extract_strided_slice %36 {offsets = [0, 0, 0], sizes = [1, 8, 256], strides = [1, 1, 1]} : vector<2x8x256xbf16> to vector<1x8x256xbf16>
    %46 = vector.shape_cast %45 : vector<1x8x256xbf16> to vector<8x256xbf16>
    %47 = tpu.concatenate %41, %46, %41 in 1 : vector<8x17xbf16>, vector<8x256xbf16>, vector<8x17xbf16> -> vector<8x290xbf16>
    %48 = vector.extract_strided_slice %40 {offsets = [0, 0, 0], sizes = [1, 8, 256], strides = [1, 1, 1]} : vector<2x8x256xbf16> to vector<1x8x256xbf16>
    %49 = vector.shape_cast %48 : vector<1x8x256xbf16> to vector<8x256xbf16>
    %50 = tpu.concatenate %41, %49, %41 in 1 : vector<8x17xbf16>, vector<8x256xbf16>, vector<8x17xbf16> -> vector<8x290xbf16>
    %51 = vector.extract_strided_slice %35 {offsets = [1, 0, 0], sizes = [1, 8, 256], strides = [1, 1, 1]} : vector<2x8x256xbf16> to vector<1x8x256xbf16>
    %52 = vector.shape_cast %51 : vector<1x8x256xbf16> to vector<8x256xbf16>
    %53 = tpu.concatenate %41, %52, %41 in 1 : vector<8x17xbf16>, vector<8x256xbf16>, vector<8x17xbf16> -> vector<8x290xbf16>
    %54 = vector.extract_strided_slice %36 {offsets = [1, 0, 0], sizes = [1, 8, 256], strides = [1, 1, 1]} : vector<2x8x256xbf16> to vector<1x8x256xbf16>
    %55 = vector.shape_cast %54 : vector<1x8x256xbf16> to vector<8x256xbf16>
    %56 = tpu.concatenate %41, %55, %41 in 1 : vector<8x17xbf16>, vector<8x256xbf16>, vector<8x17xbf16> -> vector<8x290xbf16>
    %57 = vector.extract_strided_slice %40 {offsets = [1, 0, 0], sizes = [1, 8, 256], strides = [1, 1, 1]} : vector<2x8x256xbf16> to vector<1x8x256xbf16>
    %58 = vector.shape_cast %57 : vector<1x8x256xbf16> to vector<8x256xbf16>
    %59 = tpu.concatenate %41, %58, %41 in 1 : vector<8x17xbf16>, vector<8x256xbf16>, vector<8x17xbf16> -> vector<8x290xbf16>
    %60 = vector.extract_strided_slice %44 {offsets = [0, 0], sizes = [8, 256], strides = [1, 1]} : vector<8x290xbf16> to vector<8x256xbf16>
    %61 = vector.extract_strided_slice %53 {offsets = [0, 0], sizes = [8, 256], strides = [1, 1]} : vector<8x290xbf16> to vector<8x256xbf16>
    %62 = tpu.concatenate %60, %61 in 1 : vector<8x256xbf16>, vector<8x256xbf16> -> vector<8x512xbf16>
    %63 = vector.extract_strided_slice %47 {offsets = [0, 1], sizes = [8, 256], strides = [1, 1]} : vector<8x290xbf16> to vector<8x256xbf16>
    %64 = vector.extract_strided_slice %56 {offsets = [0, 1], sizes = [8, 256], strides = [1, 1]} : vector<8x290xbf16> to vector<8x256xbf16>
    %65 = tpu.concatenate %63, %64 in 1 : vector<8x256xbf16>, vector<8x256xbf16> -> vector<8x512xbf16>
    %66 = vector.extract_strided_slice %50 {offsets = [0, 2], sizes = [8, 256], strides = [1, 1]} : vector<8x290xbf16> to vector<8x256xbf16>
    %67 = vector.extract_strided_slice %59 {offsets = [0, 2], sizes = [8, 256], strides = [1, 1]} : vector<8x290xbf16> to vector<8x256xbf16>
    %68 = tpu.concatenate %66, %67 in 1 : vector<8x256xbf16>, vector<8x256xbf16> -> vector<8x512xbf16>
    %69 = vector.extract_strided_slice %44 {offsets = [0, 16], sizes = [8, 256], strides = [1, 1]} : vector<8x290xbf16> to vector<8x256xbf16>
    %70 = vector.extract_strided_slice %53 {offsets = [0, 16], sizes = [8, 256], strides = [1, 1]} : vector<8x290xbf16> to vector<8x256xbf16>
    %71 = tpu.concatenate %69, %70 in 1 : vector<8x256xbf16>, vector<8x256xbf16> -> vector<8x512xbf16>
    %72 = vector.extract_strided_slice %47 {offsets = [0, 17], sizes = [8, 256], strides = [1, 1]} : vector<8x290xbf16> to vector<8x256xbf16>
    %73 = vector.extract_strided_slice %56 {offsets = [0, 17], sizes = [8, 256], strides = [1, 1]} : vector<8x290xbf16> to vector<8x256xbf16>
    %74 = tpu.concatenate %72, %73 in 1 : vector<8x256xbf16>, vector<8x256xbf16> -> vector<8x512xbf16>
    %75 = vector.extract_strided_slice %50 {offsets = [0, 18], sizes = [8, 256], strides = [1, 1]} : vector<8x290xbf16> to vector<8x256xbf16>
    %76 = vector.extract_strided_slice %59 {offsets = [0, 18], sizes = [8, 256], strides = [1, 1]} : vector<8x290xbf16> to vector<8x256xbf16>
    %77 = tpu.concatenate %75, %76 in 1 : vector<8x256xbf16>, vector<8x256xbf16> -> vector<8x512xbf16>
    %78 = vector.extract_strided_slice %44 {offsets = [0, 32], sizes = [8, 256], strides = [1, 1]} : vector<8x290xbf16> to vector<8x256xbf16>
    %79 = vector.extract_strided_slice %53 {offsets = [0, 32], sizes = [8, 256], strides = [1, 1]} : vector<8x290xbf16> to vector<8x256xbf16>
    %80 = tpu.concatenate %78, %79 in 1 : vector<8x256xbf16>, vector<8x256xbf16> -> vector<8x512xbf16>
    %81 = vector.extract_strided_slice %47 {offsets = [0, 33], sizes = [8, 256], strides = [1, 1]} : vector<8x290xbf16> to vector<8x256xbf16>
    %82 = vector.extract_strided_slice %56 {offsets = [0, 33], sizes = [8, 256], strides = [1, 1]} : vector<8x290xbf16> to vector<8x256xbf16>
    %83 = tpu.concatenate %81, %82 in 1 : vector<8x256xbf16>, vector<8x256xbf16> -> vector<8x512xbf16>
    %84 = vector.extract_strided_slice %50 {offsets = [0, 34], sizes = [8, 256], strides = [1, 1]} : vector<8x290xbf16> to vector<8x256xbf16>
    %85 = vector.extract_strided_slice %59 {offsets = [0, 34], sizes = [8, 256], strides = [1, 1]} : vector<8x290xbf16> to vector<8x256xbf16>
    %86 = tpu.concatenate %84, %85 in 1 : vector<8x256xbf16>, vector<8x256xbf16> -> vector<8x512xbf16>
    %87 = tpu.concatenate %62, %65, %68, %71, %74, %77, %80, %83, %86 in 0 : vector<8x512xbf16>, vector<8x512xbf16>, vector<8x512xbf16>, vector<8x512xbf16>, vector<8x512xbf16>, vector<8x512xbf16>, vector<8x512xbf16>, vector<8x512xbf16>, vector<8x512xbf16> -> vector<72x512xbf16>
    %cst_24 = arith.constant dense<0.000000e+00> : vector<8x512xf32>
    %88 = tpu.matmul %0, %87, %cst_24 {dimension_numbers = #tpu.dot_dimension_numbers<[1], [0], [0], [1], [0, 0, 1, 1], [], []>} : vector<8x72xbf16>, vector<72x512xbf16>, vector<8x512xf32> -> vector<8x512xf32>
    %89 = vector.extract_strided_slice %19 {offsets = [0, 0, 0], sizes = [1, 8, 256], strides = [1, 1, 1]} : vector<2x8x256xf32> to vector<1x8x256xf32>
    %90 = vector.shape_cast %89 : vector<1x8x256xf32> to vector<8x256xf32>
    %91 = vector.extract_strided_slice %19 {offsets = [1, 0, 0], sizes = [1, 8, 256], strides = [1, 1, 1]} : vector<2x8x256xf32> to vector<1x8x256xf32>
    %92 = vector.shape_cast %91 : vector<1x8x256xf32> to vector<8x256xf32>
    %93 = tpu.concatenate %90, %92 in 1 : vector<8x256xf32>, vector<8x256xf32> -> vector<8x512xf32>
    %94 = vector.broadcast %10 : vector<8x1xf32> to vector<8x512xf32>
    %95 = arith.mulf %88, %94 : vector<8x512xf32>
    %96 = arith.addf %93, %95 : vector<8x512xf32>
    %97 = vector.broadcast %4 : vector<8x1xf32> to vector<8x512xf32>
    %98 = arith.addf %96, %97 : vector<8x512xf32>
    %cst_25 = arith.constant 0.000000e+00 : f32
    %99 = vector.broadcast %cst_25 : f32 to vector<8x512xf32>
    %100 = arith.cmpf ogt, %98, %99 : vector<8x512xf32>
    %101 = vector.broadcast %8 : vector<8x1xf32> to vector<8x512xf32>
    %102 = arith.mulf %98, %101 : vector<8x512xf32>
    %103 = arith.select %100, %98, %102 : vector<8x512xi1>, vector<8x512xf32>
    %104 = vector.broadcast %6 : vector<8x1xf32> to vector<8x512xf32>
    %105 = arith.addf %103, %104 : vector<8x512xf32>
    %106 = vector.extract_strided_slice %105 {offsets = [0, 0], sizes = [8, 256], strides = [1, 1]} : vector<8x512xf32> to vector<8x256xf32>
    %c0_26 = arith.constant 0 : index
    %c0_27 = arith.constant 0 : index
    %c0_28 = arith.constant 0 : index
    %107 = vector.load %arg5[%c0_26, %c0_27, %c0_28] : memref<2x8x256xf32, #tpu.memory_space<vmem>>, vector<1x8x256xf32>
    %108 = vector.shape_cast %107 : vector<1x8x256xf32> to vector<8x256xf32>
    %109 = vector.shape_cast %106 : vector<8x256xf32> to vector<1x8x256xf32>
    tpu.vector_store %arg5[%c0_26, %c0_27, %c0_28], %109 {strides = array<i32>} : memref<2x8x256xf32, #tpu.memory_space<vmem>>, vector<1x8x256xf32>,
    %110 = vector.extract_strided_slice %105 {offsets = [0, 256], sizes = [8, 256], strides = [1, 1]} : vector<8x512xf32> to vector<8x256xf32>
    %c1_29 = arith.constant 1 : index
    %c0_30 = arith.constant 0 : index
    %c0_31 = arith.constant 0 : index
    %111 = vector.load %arg5[%c1_29, %c0_30, %c0_31] : memref<2x8x256xf32, #tpu.memory_space<vmem>>, vector<1x8x256xf32>
    %112 = vector.shape_cast %111 : vector<1x8x256xf32> to vector<8x256xf32>
    %113 = vector.shape_cast %110 : vector<8x256xf32> to vector<1x8x256xf32>
    tpu.vector_store %arg5[%c1_29, %c0_30, %c0_31], %113 {strides = array<i32>} : memref<2x8x256xf32, #tpu.memory_space<vmem>>, vector<1x8x256xf32>,
    return
  }
  func.func @transform_0(%arg0: i32) -> (i32, i32, i32) {
    %c0_i32 = arith.constant 0 : i32
    %c0_i32_0 = arith.constant 0 : i32
    %c0_i32_1 = arith.constant 0 : i32
    return %arg0, %c0_i32, %c0_i32_0 : i32, i32, i32
  }
  func.func @transform_1(%arg0: i32) -> (i32, i32) {
    %c0_i32 = arith.constant 0 : i32
    %c0_i32_0 = arith.constant 0 : i32
    %c0_i32_1 = arith.constant 0 : i32
    return %c0_i32, %c0_i32_0 : i32, i32
  }
  func.func @transform_2(%arg0: i32) -> (i32, i32, i32) {
    %c0_i32 = arith.constant 0 : i32
    %c0_i32_0 = arith.constant 0 : i32
    %c0_i32_1 = arith.constant 0 : i32
    %c0_i32_2 = arith.constant 0 : i32
    return %c0_i32, %c0_i32_0, %c0_i32_1 : i32, i32, i32
  }
  func.func @transform_3(%arg0: i32) -> (i32, i32) {
    %c0_i32 = arith.constant 0 : i32
    %c0_i32_0 = arith.constant 0 : i32
    %c0_i32_1 = arith.constant 0 : i32
    return %c0_i32, %c0_i32_0 : i32, i32
  }
  func.func @transform_4(%arg0: i32) -> (i32, i32, i32) {
    %c0_i32 = arith.constant 0 : i32
    %c0_i32_0 = arith.constant 0 : i32
    %c0_i32_1 = arith.constant 0 : i32
    return %arg0, %c0_i32, %c0_i32_0 : i32, i32, i32
  }
}

</mosaic_0001>

<bundles_post_ra>
// kernel: ff_biconv3_forward.1
= control target key start
LH: loop header
LB: loop body
LE: loop exit
PB: predicated region body
PF: predicated region fallthrough
CT: control target
= control target key end

     0   :  { %s911_s15 = smov 0   ;;  %s1104_s0 = inlined_call_operand.vmem [shape: f32[8,8,256], index: 0, kind: input, shape index: {}]   ;;  %s1105_s1 = inlined_call_operand.vmem [shape: bf16[8,72], index: 1, kind: input, shape index: {}]   ;;  %s1106_s2 = inlined_call_operand.vmem [shape: f32[6,8,1], index: 2, kind: input, shape index: {}]   ;;  %s1107_s3 = inlined_call_operand.vmem [shape: f32[2,256], index: 3, kind: input, shape index: {}]   ;;  %s1108_s4 = inlined_call_operand.vmem [shape: f32[8,8,256], index: 4, kind: output, shape index: {}]  }
   0x1 LB: > { %s820_s16 = sadd.s32 4294967295, %s873_s15   ;;  %p824_p0 = scmp.ge.s32.totalorder %s873_s15, 1  ;;  %s873_s15 = sphi %s911_s15, %s14_s15  }
   0x2   : > { %p164_p1 = scmp.lt.s32.totalorder %s873_s15, 5 }
   0x4   : > { %p165_p2 = pnand %p824_p0, %p164_p1 }
   0x5   : > { %v835_v0 = vld [vmem:[%s1106_s2 + $0x28] sm:$0xff] (!%p165_p2)  ;;  %v875_v1 = vmov (!%p165_p2), 0   ;;  %v208_v2 = vld [vmem:[%s1106_s2] sm:$0xff] (!%p165_p2)  ;;  %s825_s21 = sshll.u32 (!%p165_p2), %s820_s16, 1  ;;  %v259_v3 = vlaneseq (!%p165_p2)  ;;  %v876_v25 = vmov (!%p165_p2), 0.0   ;;  %s877_s28 = smov (!%p165_p2), 17  }
   0x6   : > { %168 = sbr.rel (%p165_p2) target bundleno = 704 (0x2c0), region = 36  ;;  %865 = vset.pattern.permute.xlu0 (!%p165_p2), %v875_v1  ;;  %659 = vmatprep.mubr.bf16.mxu0 (!%p165_p2), %v875_v1  ;;  %p193_p3 = scmp.lt.s32.totalorder (!%p165_p2), %s825_s21, 7  ;;  %v219_v10 = vld [vmem:[%s1107_s3] sm:$0xf] (!%p165_p2)  ;;  %vm321_vm8 = vcmask (!%p165_p2), 138240   ;;  %vm392_vm9 = vcmask (!%p165_p2), 1039360  }
   0x7   : > { %226 = vperm.xlu0 (!%p165_p2), %865, %v835_v0   ;;  %700 = vmatprep.mubr.bf16.mxu1 (!%p165_p2), %v875_v1  ;;  %v260_v4 = vshrl.u32 (!%p165_p2), %v259_v3, 7  ;;  %s878_s29 = smov (!%p165_p2), 127   ;;  %s879_s30 = smov (!%p165_p2), 111   ;;  %vm548_vm10 = vcmask (!%p165_p2), 1043456   ;;  %vm434_vm11 = vcmask (!%p165_p2), 916480   ;;  %vm413_vm12 = vcmask (!%p165_p2), 1031168  }
   0x8   : > { %866 = vset.pattern.permute.xlu1 (!%p165_p2), %v875_v1  ;;  %s880_s5 = smov (!%p165_p2), 95   ;;  %s881_s6 = smov (!%p165_p2), 112   ;;  %vm470_vm13 = vcmask (!%p165_p2), 900096   ;;  %vm453_vm14 = vcmask (!%p165_p2), 908288   ;;  %vm504_vm15 = vcmask (!%p165_p2), 777216  }
   0x9   : > { %v261_v6 = vsub.s32 (!%p165_p2), 0, %v260_v4  ;;  %v265_v22 = vsub.s32 (!%p165_p2), 2, %v260_v4  ;;  %v291_v23 = vsub.s32 (!%p165_p2), 1, %v260_v4  ;;  %v295_v43 = vsub.s32 (!%p165_p2), 3, %v260_v4  ;;  %s882_s7 = smov (!%p165_p2), 126   ;;  %s883_s8 = smov (!%p165_p2), 110  }
   0xa   : > { %s884_s9 = smov (!%p165_p2), 96   ;;  %s885_s10 = smov (!%p165_p2), 94  }
   0xb   : > { %235 = vperm.xlu0 (!%p165_p2), %865, %v208_v2   ;;  %v262_v15 = vrot.slane (!%p165_p2), %v219_v10, %v261_v6  ;;  %v292_v32 = vrot.slane (!%p165_p2), %v219_v10, %v291_v23  ;;  %v266_v35 = vrot.slane (!%p165_p2), %v219_v10, %v265_v22  ;;  %v296_v49 = vrot.slane (!%p165_p2), %v219_v10, %v295_v43 }
   0xd   : > { %s1110_s21 = smov (!%p193_p3, %s825_s21), 7  ;;  %v272_v24 = vrot.slane %v262_v15, %v261_v6  ;;  %v302_v40 = vrot.slane %v292_v32, %v291_v23  ;;  %v276_v42 = vrot.slane %v266_v35, %v261_v6  ;;  %v306_v54 = vrot.slane %v296_v49, %v291_v23  ;;  %v833_v32 = vld [vmem:[%s1106_s2 + $0x18] sm:$0xff] }
   0xe   : > { %s844_s22 = sshll.u32 %s1110_s21, 4 }
   0xf   : > { %s197_s25 = scalar_lea.vmem %s1104_s0, %s844_s22  ;;  %s204_s26 = scalar_lea.vmem %s1108_s4, %s844_s22 }
  0x10   : > { %v220_v5 = vld [vmem:[%s197_s25] sm:$0xff]  ;;  %v221_v8 = vld [vmem:[%s197_s25 + $0x8] sm:$0xff]  ;;  %v222_v9 = vld [vmem:[%s197_s25 + $0x10] sm:$0xff] }
  0x11   : > { %v223_v11 = vld [vmem:[%s197_s25 + $0x18] sm:$0xff] }
  0x86   : > { %v227_v7 = vpop.permute.xlu0 %226 }
  0x87   : > { %v936_v12 = vmul.f32 %v227_v7, %v220_v5  ;;  %v938_v13 = vmul.f32 %v227_v7, %v221_v8  ;;  %v940_v14 = vmul.f32 %v227_v7, %v222_v9  ;;  %v942_v16 = vmul.f32 %v227_v7, %v223_v11 }
  0x8a   : > { %v236_v17 = vpop.permute.xlu0 %235 }
  0x8b   : > { %v238_v18 = vadd.f32 %v236_v17, %v936_v12  ;;  %v239_v19 = vadd.f32 %v236_v17, %v938_v13  ;;  %v240_v20 = vadd.f32 %v236_v17, %v940_v14  ;;  %v241_v21 = vadd.f32 %v236_v17, %v942_v16 }
  0x8d   : > { %vm247_vm0 = vcmp.lt.f32.partialorder %v239_v19, 0.0  ;;  %vm248_vm1 = vcmp.lt.f32.partialorder %v240_v20, 0.0  ;;  %vm244_vm2 = vcmp.gt.f32.partialorder %v240_v20, 0.0  ;;  %vm242_vm3 = vcmp.gt.f32.partialorder %v238_v18, 0.0 }
  0x8e   : > { %v252_v26 = vsel %vm248_vm1, -1.0, %v876_v25  ;;  %vm246_vm4 = vcmp.lt.f32.partialorder %v238_v18, 0.0  ;;  %vm243_vm5 = vcmp.gt.f32.partialorder %v239_v19, 0.0  ;;  %v251_v29 = vsel %vm247_vm0, -1.0, %v876_v25 }
  0x8f   : > { %v256_v27 = vsel %vm244_vm2, 1.0, %v252_v26  ;;  %v250_v28 = vsel %vm246_vm4, -1.0, %v876_v25  ;;  %vm249_vm6 = vcmp.lt.f32.partialorder %v241_v21, 0.0  ;;  %v255_v36 = vsel %vm243_vm5, 1.0, %v251_v29 }
  0x90   : > { %v287_v30 = vpack.c.bf16 %v256_v27, %v256_v27  ;;  %v254_v31 = vsel %vm242_vm3, 1.0, %v250_v28  ;;  %vm245_vm7 = vcmp.gt.f32.partialorder %v241_v21, 0.0  ;;  %v253_v37 = vsel %vm249_vm6, -1.0, %v876_v25 }
  0x91   : > { %v285_v33 = vpack.c.bf16 %v254_v31, %v254_v31  ;;  %v277_v34 = vmul.f32 %v272_v24, %v254_v31  ;;  %v279_v39 = vmul.f32 %v272_v24, %v256_v27  ;;  %v286_v41 = vpack.c.bf16 %v255_v36, %v255_v36 }
  0x92   : > { %364 = vrot.lane.b32.xlu0 %v287_v30, %s877_s28  ;;  %v257_v44 = vsel %vm245_vm7, 1.0, %v253_v37  ;;  %v307_v46 = vmul.f32 %v302_v40, %v254_v31  ;;  %v278_v48 = vmul.f32 %v276_v42, %v255_v36  ;;  %v309_v51 = vmul.f32 %v302_v40, %v256_v27  ;;  %v834_v31 = vld [vmem:[%s1106_s2 + $0x20] sm:$0xff] }
  0x93   : > { %331 = vrot.lane.b32.xlu1 %v285_v33, %s877_s28  ;;  %v281_v38 = vpack.c.bf16 %v277_v34, %v277_v34  ;;  %v283_v45 = vpack.c.bf16 %v279_v39, %v279_v39  ;;  %v288_v47 = vpack.c.bf16 %v257_v44, %v257_v44  ;;  %v280_v53 = vmul.f32 %v276_v42, %v257_v44  ;;  %v831_v33 = vld [vmem:[%s1106_s2 + $0x8] sm:$0xff]  ;;  %v832_v34 = vld [vmem:[%s1106_s2 + $0x10] sm:$0xff] }
  0x94   : > { %v311_v50 = vpack.c.bf16 %v307_v46, %v307_v46  ;;  %v282_v52 = vpack.c.bf16 %v278_v48, %v278_v48  ;;  %v313_v55 = vpack.c.bf16 %v309_v51, %v309_v51  ;;  %v308_v57 = vmul.f32 %v306_v54, %v255_v36 }
  0x95   : > { %v284_v56 = vpack.c.bf16 %v280_v53, %v280_v53  ;;  %v310_v59 = vmul.f32 %v306_v54, %v257_v44  ;;  %vm487_vm0 = vcmask 785408   ;;  %vm521_vm1 = vcmask 769024  }
  0x96   : > { %317 = vrot.lane.b32.xlu0 %v281_v38, %s877_s28  ;;  %v312_v58 = vpack.c.bf16 %v308_v57, %v308_v57  ;;  %vm611_vm2 = vcmask 588800  }
  0x97   : > { %333 = vrot.lane.b32.xlu1 %v286_v41, %s877_s28  ;;  %v314_v60 = vpack.c.bf16 %v310_v59, %v310_v59 }
  0x9a   : > { %353 = vrot.lane.b32.xlu0 %v283_v45, %s877_s28 }
  0x9b   : > { %366 = vrot.lane.b32.xlu1 %v288_v47, %s877_s28 }
  0x9e   : > { %342 = vrot.lane.b32.xlu0 %v311_v50, %s877_s28 }
  0x9f   : > { %319 = vrot.lane.b32.xlu1 %v282_v52, %s877_s28 }
  0xa2   : > { %375 = vrot.lane.b32.xlu0 %v313_v55, %s877_s28 }
  0xa3   : > { %355 = vrot.lane.b32.xlu1 %v284_v56, %s877_s28 }
  0xa7   : > { %344 = vrot.lane.b32.xlu1 %v312_v58, %s877_s28 }
  0xab   : > { %377 = vrot.lane.b32.xlu1 %v314_v60, %s877_s28 }
 0x104   : > { %v365_v1 = vpop.permute.xlu0 %364 }
 0x105   : > { %v332_v61 = vpop.permute.xlu1 %331  ;;  %v370_v5 = vsel %vm321_vm8, 0, %v365_v1 }
 0x106   : > { %v337_v4 = vsel %vm321_vm8, 0, %v332_v61 }
 0x108   : > { %v318_v8 = vpop.permute.xlu0 %317 }
 0x109   : > { %v334_v62 = vpop.permute.xlu1 %333  ;;  %v972_v17 = vsel %vm321_vm8, 0, %v318_v8 }
 0x10a   : > { %v339_v63 = vsel %vm321_vm8, %v334_v62, 0  ;;  %v335_v0 = vsel %vm321_vm8, %v332_v61, %v334_v62 }
 0x10b   : > { %390 = vrot.lane.b32.xlu1 %v339_v63, %s878_s29  ;;  %388 = vrot.lane.b32.xlu0 %v335_v0, %s878_s29 }
 0x10c   : > { %v354_v15 = vpop.permute.xlu0 %353 }
 0x10d   : > { %v367_v2 = vpop.permute.xlu1 %366  ;;  %v983_v24 = vsel %vm321_vm8, 0, %v354_v15 }
 0x10e   : > { %v368_v3 = vsel %vm321_vm8, %v365_v1, %v367_v2  ;;  %v372_v6 = vsel %vm321_vm8, %v367_v2, 0 }
 0x10f   : > { %399 = vrot.lane.b32.xlu1 %v368_v3, %s878_s29  ;;  %386 = vrot.lane.b32.xlu0 %v337_v4, %s878_s29 }
 0x110   : > { %v343_v20 = vpop.permute.xlu0 %342 }
 0x111   : > { %v320_v7 = vpop.permute.xlu1 %319  ;;  %v348_v27 = vsel %vm321_vm8, 0, %v343_v20 }
 0x112   : > { %v328_v10 = vsel %vm321_vm8, %v320_v7, 0  ;;  %v968_v11 = vsel %vm321_vm8, %v318_v8, %v320_v7 }
 0x113   : > { %397 = vrot.lane.b32.xlu1 %v370_v5, %s878_s29  ;;  %401 = vrot.lane.b32.xlu0 %v372_v6, %s878_s29 }
 0x114   : > { %v376_v26 = vpop.permute.xlu0 %375 }
 0x115   : > { %v356_v9 = vpop.permute.xlu1 %355  ;;  %v381_v30 = vsel %vm321_vm8, 0, %v376_v26 }
 0x116   : > { %v975_v18 = vsel %vm321_vm8, %v354_v15, %v356_v9  ;;  %v361_v21 = vsel %vm321_vm8, %v356_v9, 0 }
 0x117   : > { %449 = vrot.lane.b32.xlu1 %v335_v0, %s879_s30  ;;  %451 = vrot.lane.b32.xlu0 %v339_v63, %s879_s30 }
 0x119   : > { %v345_v19 = vpop.permute.xlu1 %344 }
 0x11a   : > { %v346_v22 = vsel %vm321_vm8, %v343_v20, %v345_v19  ;;  %v350_v23 = vsel %vm321_vm8, %v345_v19, 0 }
 0x11b   : > { %458 = vrot.lane.b32.xlu1 %v368_v3, %s879_s30  ;;  %447 = vrot.lane.b32.xlu0 %v337_v4, %s879_s30 }
 0x11d   : > { %v378_v25 = vpop.permute.xlu1 %377 }
 0x11e   : > { %v379_v28 = vsel %vm321_vm8, %v376_v26, %v378_v25  ;;  %v383_v29 = vsel %vm321_vm8, %v378_v25, 0 }
 0x11f   : > { %456 = vrot.lane.b32.xlu1 %v370_v5, %s879_s30  ;;  %460 = vrot.lane.b32.xlu0 %v372_v6, %s879_s30 }
 0x123   : > { %502 = vrot.lane.b32.xlu1 %v339_v63, %s880_s5  ;;  %500 = vrot.lane.b32.xlu0 %v335_v0, %s880_s5 }
 0x127   : > { %509 = vrot.lane.b32.xlu1 %v368_v3, %s880_s5  ;;  %498 = vrot.lane.b32.xlu0 %v337_v4, %s880_s5 }
 0x12b   : > { %507 = vrot.lane.b32.xlu1 %v370_v5, %s880_s5  ;;  %511 = vrot.lane.b32.xlu0 %v372_v6, %s880_s5 }
 0x12f   : > { %432 = vrot.lane.b32.xlu1 %v328_v10, %s881_s6  ;;  %430 = vrot.lane.b32.xlu0 %v968_v11, %s881_s6 }
 0x133   : > { %428 = vrot.lane.b32.xlu0 %v972_v17, %s881_s6  ;;  %441 = vrot.lane.b32.xlu1 %v975_v18, %s881_s6 }
 0x137   : > { %443 = vrot.lane.b32.xlu0 %v361_v21, %s881_s6  ;;  %409 = vrot.lane.b32.xlu1 %v346_v22, %s882_s7 }
 0x13b   : > { %411 = vrot.lane.b32.xlu0 %v350_v23, %s882_s7  ;;  %439 = vrot.lane.b32.xlu1 %v983_v24, %s881_s6 }
 0x13f   : > { %407 = vrot.lane.b32.xlu0 %v348_v27, %s882_s7  ;;  %420 = vrot.lane.b32.xlu1 %v379_v28, %s882_s7 }
 0x143   : > { %422 = vrot.lane.b32.xlu0 %v383_v29, %s882_s7  ;;  %418 = vrot.lane.b32.xlu1 %v381_v30, %s882_s7 }
 0x147   : > { %466 = vrot.lane.b32.xlu0 %v346_v22, %s883_s8  ;;  %468 = vrot.lane.b32.xlu1 %v350_v23, %s883_s8 }
 0x14b   : > { %464 = vrot.lane.b32.xlu0 %v348_v27, %s883_s8  ;;  %475 = vrot.lane.b32.xlu1 %v379_v28, %s883_s8 }
 0x14f   : > { %477 = vrot.lane.b32.xlu0 %v383_v29, %s883_s8  ;;  %473 = vrot.lane.b32.xlu1 %v381_v30, %s883_s8 }
 0x153   : > { %485 = vrot.lane.b32.xlu0 %v328_v10, %s884_s9  ;;  %483 = vrot.lane.b32.xlu1 %v968_v11, %s884_s9 }
 0x157   : > { %481 = vrot.lane.b32.xlu0 %v972_v17, %s884_s9  ;;  %492 = vrot.lane.b32.xlu1 %v975_v18, %s884_s9 }
 0x15b   : > { %494 = vrot.lane.b32.xlu0 %v361_v21, %s884_s9  ;;  %490 = vrot.lane.b32.xlu1 %v983_v24, %s884_s9 }
 0x15f   : > { %515 = vrot.lane.b32.xlu0 %v348_v27, %s885_s10  ;;  %517 = vrot.lane.b32.xlu1 %v346_v22, %s885_s10 }
 0x163   : > { %519 = vrot.lane.b32.xlu0 %v350_v23, %s885_s10  ;;  %524 = vrot.lane.b32.xlu1 %v381_v30, %s885_s10 }
 0x167   : > { %526 = vrot.lane.b32.xlu0 %v379_v28, %s885_s10  ;;  %528 = vrot.lane.b32.xlu1 %v383_v29, %s885_s10 }
 0x16b   : > { %711 = vperm.xlu0 %865, %v834_v31   ;;  %724 = vperm.xlu1 %866, %v831_v33  }
 0x16f   : > { %737 = vperm.xlu0 %865, %v833_v32   ;;  %750 = vperm.xlu1 %866, %v832_v34  }
 0x17d   : > { %v391_v35 = vpop.permute.xlu1 %390  ;;  %v389_v36 = vpop.permute.xlu0 %388 }
 0x17e   : > { %v394_v37 = vsel %vm392_vm9, %v389_v36, %v391_v35 }
 0x17f   : > { %v533_v38 = vrot.slane %v394_v37, 4 }
 0x181   : > { %v400_v39 = vpop.permute.xlu1 %399  ;;  %v387_v40 = vpop.permute.xlu0 %386  ;;  %v554_v41 = vsel %vm548_vm10, %v968_v11, %v533_v38 }
 0x182   : > { %v393_v42 = vsel %vm392_vm9, %v387_v40, %v389_v36  ;;  %627 = vmatprep.subr.bf16.mxu0 %v554_v41 }
 0x183   : > { %v532_v43 = vrot.slane %v393_v42, 4 }
 0x185   : > { %v398_v44 = vpop.permute.xlu1 %397  ;;  %v402_v45 = vpop.permute.xlu0 %401  ;;  %v550_v46 = vsel %vm548_vm10, %v972_v17, %v532_v43 }
 0x186   : > { %v403_v47 = vsel %vm392_vm9, %v398_v44, %v400_v39  ;;  %v404_v48 = vsel %vm392_vm9, %v400_v39, %v402_v45  ;;  %628 = vmatpush1.bf16.msra.mxu0 %v550_v46 }
 0x187   : > { %v534_v49 = vrot.slane %v403_v47, 4  ;;  %v535_v50 = vrot.slane %v404_v48, 4 }
 0x189   : > { %v1014_v51 = vpop.permute.xlu1 %449  ;;  %v452_v52 = vpop.permute.xlu0 %451  ;;  %v561_v53 = vsel %vm548_vm10, %v975_v18, %v535_v50  ;;  %v557_v54 = vsel %vm548_vm10, %v983_v24, %v534_v49 }
 0x18a   : > { %668 = vmatprep.subr.bf16.mxu1 %v561_v53  ;;  %v455_v37 = vsel %vm453_vm14, %v1014_v51, %v452_v52 }
 0x18b   : > { %669 = vmatpush1.bf16.msra.mxu1 %v557_v54 }
 0x18d   : > { %v1020_v55 = vpop.permute.xlu1 %458  ;;  %v448_v56 = vpop.permute.xlu0 %447 }
 0x18e   : > { %v454_v43 = vsel %vm453_vm14, %v448_v56, %v1014_v51 }
 0x191   : > { %v1022_v57 = vpop.permute.xlu1 %456  ;;  %v1024_v58 = vpop.permute.xlu0 %460 }
 0x192   : > { %v462_v53 = vsel %vm453_vm14, %v1022_v57, %v1020_v55  ;;  %v463_v51 = vsel %vm453_vm14, %v1020_v55, %v1024_v58 }
 0x195   : > { %v503_v59 = vpop.permute.xlu1 %502  ;;  %v1026_v60 = vpop.permute.xlu0 %500 }
 0x196   : > { %v506_v47 = vsel %vm504_vm15, %v1026_v60, %v503_v59 }
 0x197   : > { %v545_v54 = vrot.slane %v506_v47, 4 }
 0x199   : > { %v1028_v61 = vpop.permute.xlu1 %509  ;;  %v1030_v62 = vpop.permute.xlu0 %498 }
 0x19d   : > { %v1032_v63 = vpop.permute.xlu1 %507  ;;  %v1034_v0 = vpop.permute.xlu0 %511 }
 0x1a1   : > { %v433_v1 = vpop.permute.xlu1 %432  ;;  %v431_v2 = vpop.permute.xlu0 %430 }
 0x1a2   : > { %v436_v7 = vsel %vm434_vm11, %v431_v2, %v433_v1 }
 0x1a3   : > { %v537_v8 = vrot.slane %v436_v7, 4  ;;  %v514_v7 = vsel %vm504_vm15, %v1028_v61, %v1034_v0 }
 0x1a5   : > { %v442_v3 = vpop.permute.xlu1 %441  ;;  %v429_v4 = vpop.permute.xlu0 %428 }
 0x1a6   : > { %v435_v11 = vsel %vm434_vm11, %v429_v4, %v431_v2 }
 0x1a7   : > { %v536_v18 = vrot.slane %v435_v11, 4 }
 0x1a9   : > { %v410_v5 = vpop.permute.xlu1 %409  ;;  %v444_v6 = vpop.permute.xlu0 %443 }
 0x1aa   : > { %v446_v21 = vsel %vm434_vm11, %v442_v3, %v444_v6  ;;  %v513_v6 = vsel %vm504_vm15, %v1032_v63, %v1028_v61 }
 0x1ab   : > { %v539_v25 = vrot.slane %v446_v21, 4 }
 0x1ad   : > { %v440_v9 = vpop.permute.xlu1 %439  ;;  %v412_v10 = vpop.permute.xlu0 %411 }
 0x1ae   : > { %v415_v15 = vsel %vm413_vm12, %v410_v5, %v412_v10  ;;  %v445_v22 = vsel %vm434_vm11, %v440_v9, %v442_v3  ;;  %v505_v3 = vsel %vm504_vm15, %v1030_v62, %v1026_v60  ;;  %v547_v9 = vrot.slane %v514_v7, 4 }
 0x1af   : > { %v569_v17 = vsel %vm548_vm10, %v415_v15, %v537_v8  ;;  %v538_v26 = vrot.slane %v445_v22, 4  ;;  %v546_v8 = vrot.slane %v513_v6, 4 }
 0x1b0   : > { %629 = vmatprep.subr.bf16.mxu0 %v569_v17 }
 0x1b1   : > { %v421_v19 = vpop.permute.xlu1 %420  ;;  %v408_v20 = vpop.permute.xlu0 %407 }
 0x1b2   : > { %v414_v23 = vsel %vm413_vm12, %v408_v20, %v410_v5  ;;  %v544_v5 = vrot.slane %v505_v3, 4 }
 0x1b3   : > { %v565_v24 = vsel %vm548_vm10, %v414_v23, %v536_v18 }
 0x1b4   : > { %630 = vmatpush1.bf16.msra.mxu0 %v565_v24  ;;  %v207_v24 = vld [vmem:[%s1105_s1] sm:$0xf] }
 0x1b5   : > { %v419_v27 = vpop.permute.xlu1 %418  ;;  %v423_v28 = vpop.permute.xlu0 %422 }
 0x1b6   : > { %v424_v29 = vsel %vm413_vm12, %v419_v27, %v421_v19  ;;  %v425_v30 = vsel %vm413_vm12, %v421_v19, %v423_v28 }
 0x1b7   : > { %v577_v31 = vsel %vm548_vm10, %v425_v30, %v539_v25  ;;  %v573_v32 = vsel %vm548_vm10, %v424_v29, %v538_v26 }
 0x1b8   : > { %670 = vmatprep.subr.bf16.mxu1 %v577_v31 }
 0x1b9   : > { %v469_v33 = vpop.permute.xlu1 %468  ;;  %671 = vmatpush1.bf16.msra.mxu1 %v573_v32  ;;  %v467_v34 = vpop.permute.xlu0 %466 }
 0x1ba   : > { %v472_v35 = vsel %vm470_vm13, %v467_v34, %v469_v33 }
 0x1bb   : > { %v541_v36 = vrot.slane %v472_v35, 4 }
 0x1bd   : > { %v476_v38 = vpop.permute.xlu1 %475  ;;  %v465_v39 = vpop.permute.xlu0 %464  ;;  %v585_v40 = vsel %vm548_vm10, %v455_v37, %v541_v36 }
 0x1be   : > { %v471_v41 = vsel %vm470_vm13, %v465_v39, %v467_v34  ;;  %631 = vmatprep.subr.bf16.mxu0 %v585_v40 }
 0x1bf   : > { %v540_v42 = vrot.slane %v471_v41, 4 }
 0x1c1   : > { %v474_v44 = vpop.permute.xlu1 %473  ;;  %v478_v45 = vpop.permute.xlu0 %477  ;;  %v581_v46 = vsel %vm548_vm10, %v454_v43, %v540_v42 }
 0x1c2   : > { %v479_v48 = vsel %vm470_vm13, %v474_v44, %v476_v38  ;;  %v480_v49 = vsel %vm470_vm13, %v476_v38, %v478_v45  ;;  %632 = vmatpush1.bf16.msra.mxu0 %v581_v46 }
 0x1c3   : > { %v542_v50 = vrot.slane %v479_v48, 4  ;;  %v543_v52 = vrot.slane %v480_v49, 4 }
 0x1c5   : > { %v484_v56 = vpop.permute.xlu1 %483  ;;  %v486_v1 = vpop.permute.xlu0 %485  ;;  %v593_v59 = vsel %vm548_vm10, %v463_v51, %v543_v52  ;;  %v589_v2 = vsel %vm548_vm10, %v462_v53, %v542_v50 }
 0x1c6   : > { %v489_v4 = vsel %vm487_vm0, %v484_v56, %v486_v1  ;;  %672 = vmatprep.subr.bf16.mxu1 %v593_v59 }
 0x1c7   : > { %673 = vmatpush1.bf16.msra.mxu1 %v589_v2  ;;  %v601_v57 = vsel %vm548_vm10, %v489_v4, %v545_v54 }
 0x1c8   : > { %633 = vmatprep.subr.bf16.mxu0 %v601_v57 }
 0x1c9   : > { %v493_v55 = vpop.permute.xlu1 %492  ;;  %v482_v58 = vpop.permute.xlu0 %481 }
 0x1ca   : > { %v488_v60 = vsel %vm487_vm0, %v482_v58, %v484_v56 }
 0x1cb   : > { %v597_v62 = vsel %vm548_vm10, %v488_v60, %v544_v5 }
 0x1cc   : > { %634 = vmatpush1.bf16.msra.mxu0 %v597_v62 }
 0x1cd   : > { %v491_v10 = vpop.permute.xlu1 %490  ;;  %v495_v11 = vpop.permute.xlu0 %494 }
 0x1ce   : > { %v496_v15 = vsel %vm487_vm0, %v491_v10, %v493_v55  ;;  %v497_v17 = vsel %vm487_vm0, %v493_v55, %v495_v11 }
 0x1cf   : > { %v609_v18 = vsel %vm548_vm10, %v497_v17, %v547_v9  ;;  %v605_v63 = vsel %vm548_vm10, %v496_v15, %v546_v8 }
 0x1d0   : > { %674 = vmatprep.subr.bf16.mxu1 %v609_v18 }
 0x1d1   : > { %v518_v19 = vpop.permute.xlu1 %517  ;;  %675 = vmatpush1.bf16.msra.mxu1 %v605_v63  ;;  %v516_v61 = vpop.permute.xlu0 %515 }
 0x1d2   : > { %v522_v0 = vsel %vm521_vm1, %v516_v61, %v518_v19 }
 0x1d3   : > { %v616_v23 = vsel %vm548_vm10, %v522_v0, 0 }
 0x1d5   : > { %v525_v20 = vpop.permute.xlu1 %524  ;;  %v520_v21 = vpop.permute.xlu0 %519 }
 0x1d6   : > { %v523_v22 = vsel %vm521_vm1, %v518_v19, %v520_v21 }
 0x1d7   : > { %836 = vmatprep.subr.msk.bf16.mxu0 %vm548_vm10, %v523_v22 }
 0x1d8   : > { %636 = vmatpush1.bf16.msra.mxu0 %v616_v23 }
 0x1d9   : > { %v529_v25 = vpop.permute.xlu1 %528  ;;  %v527_v26 = vpop.permute.xlu0 %526 }
 0x1da   : > { %v530_v27 = vsel %vm521_vm1, %v525_v20, %v527_v26  ;;  %v531_v28 = vsel %vm521_vm1, %v527_v26, %v529_v25 }
 0x1db   : > { %837 = vmatmul.mubr.msk.bf16.vlgmr.msra.gmra.mrb[0].mxu0 %vm611_vm2, %v207_v24  ;;  %838 = vmatprep.subr.msk.bf16.mxu1 %vm548_vm10, %v531_v28  ;;  %v622_v29 = vsel %vm548_vm10, %v530_v27, 0 }
 0x1dc   : > { %677 = vmatpush1.bf16.msra.mxu1 %v622_v29 }
 0x1df   : > { %839 = vmatmul.mubr.msk.bf16.vlgmr.msra.gmra.mrb[0].mxu1 %vm611_vm2, %v207_v24 }
 0x1ea   : > { %v712_v30 = vpop.permute.xlu0 %711  ;;  %v725_v34 = vpop.permute.xlu1 %724 }
 0x1ee   : > { %v738_v44 = vpop.permute.xlu0 %737  ;;  %v751_v50 = vpop.permute.xlu1 %750 }
 0x2ae   : > { %v661_v31 = vpop.f32.mrb[0].mxu0 }
 0x2af   : > { %v714_v32 = vmul.f32 %v712_v30, %v661_v31  ;;  %v663_v33 = vpop.f32.mrb[1].mxu0 }
 0x2b0   : > { %v715_v35 = vmul.f32 %v712_v30, %v663_v33  ;;  %v665_v36 = vpop.f32.mrb[2].mxu0 }
 0x2b1   : > { %v718_v37 = vadd.f32 %v714_v32, %v936_v12  ;;  %v666_v38 = vpop.f32.mrb[3].mxu0 }
 0x2b2   : > { %v719_v39 = vadd.f32 %v715_v35, %v938_v13  ;;  %v702_v40 = vpop.f32.mrb[0].mxu1 }
 0x2b3   : > { %v727_v41 = vadd.f32 %v725_v34, %v718_v37  ;;  %v716_v42 = vmul.f32 %v712_v30, %v702_v40  ;;  %v704_v43 = vpop.f32.mrb[1].mxu1 }
 0x2b4   : > { %v728_v45 = vadd.f32 %v725_v34, %v719_v39  ;;  %v717_v46 = vmul.f32 %v712_v30, %v704_v43  ;;  %v706_v47 = vpop.f32.mrb[2].mxu1 }
 0x2b5   : > { %v720_v48 = vadd.f32 %v716_v42, %v940_v14  ;;  %v707_v49 = vpop.f32.mrb[3].mxu1  ;;  %vm731_vm3 = vcmp.gt.f32.partialorder %v727_v41, 0.0  ;;  %v740_v52 = vmul.f32 %v738_v44, %v727_v41 }
 0x2b6   : > { %v721_v12 = vadd.f32 %v717_v46, %v942_v16  ;;  %vm732_vm4 = vcmp.gt.f32.partialorder %v728_v45, 0.0  ;;  %v741_v53 = vmul.f32 %v738_v44, %v728_v45 }
 0x2b7   : > { %v729_v13 = vadd.f32 %v725_v34, %v720_v48  ;;  %v744_v51 = vsel %vm731_vm3, %v727_v41, %v740_v52 }
 0x2b8   : > { %v730_v54 = vadd.f32 %v725_v34, %v721_v12  ;;  %v745_v56 = vsel %vm732_vm4, %v728_v45, %v741_v53  ;;  %v753_v1 = vadd.f32 %v751_v50, %v744_v51 }
 0x2b9   : > { %vm733_vm5 = vcmp.gt.f32.partialorder %v729_v13, 0.0  ;;  %v742_v14 = vmul.f32 %v738_v44, %v729_v13  ;;  %v754_v59 = vadd.f32 %v751_v50, %v745_v56 }
 0x2ba   : > { %vm734_vm6 = vcmp.gt.f32.partialorder %v730_v54, 0.0  ;;  %v743_v2 = vmul.f32 %v738_v44, %v730_v54  ;;  %757 = vst [vmem:[%s204_s26] sm:$0xff] %v753_v1 }
 0x2bb   : > { %v746_v3 = vsel %vm733_vm5, %v729_v13, %v742_v14  ;;  %758 = vst [vmem:[%s204_s26 + $0x8] sm:$0xff] %v754_v59 }
 0x2bc   : > { %v747_v16 = vsel %vm734_vm6, %v730_v54, %v743_v2  ;;  %v755_v4 = vadd.f32 %v751_v50, %v746_v3 }
 0x2bd   : > { %v756_v57 = vadd.f32 %v751_v50, %v747_v16 }
 0x2be   : > { %840 = vst [vmem:[%s204_s26 + $0x10] sm:$0xff] %v755_v4 }
 0x2bf   : > { %841 = vst [vmem:[%s204_s26 + $0x18] sm:$0xff] %v756_v57 }
 0x2c0 PF: > { %s14_s15 = sadd.s32 1, %s873_s15  }
 0x2c1   : > { %p11_p4 = scmp.ge.s32.totalorder %s14_s15, 6  }
 0x2c3   :  { %13 = sbr.rel (!%p11_p4) target bundleno = 1 (0x1), region = 72 }

</bundles_post_ra>
